<compile_context>
chip_gen: v5e
topology: v5e:2x2
jax: 0.10.0
libtpu: 0.0.40
codegen_flags: <defaults>
</compile_context>

<pallas_src>
import jax
import jax.numpy as jnp
from jax.experimental import pallas as pl
from jax.experimental.pallas import tpu as pltpu


# -----------------------------------------------------------------------------
# tiling helpers
# -----------------------------------------------------------------------------
def _plane_view(hl, wl):
    """Reinterpret the (Hl, Wl) plane as (rows, lanes) with a lane-dense last
    dim (multiple of 128) and rows divisible by 8 when possible; otherwise
    fall back to the natural (Hl, Wl) view.  Pure row-major reshape -> free."""
    p = hl * wl
    for lanes in range(1024, 127, -128):
        if p % lanes == 0 and (p // lanes) % 8 == 0:
            return p // lanes, lanes
    return hl, wl


def _pick_row_tile(rows, lanes, per_pixel_f32, budget_bytes=8 << 20):
    """Largest row tile (multiple of 8 dividing rows, or rows itself) whose
    per-step working set (per_pixel_f32 f32 elements per pixel, already
    including double-buffering) fits in budget_bytes."""
    cands = sorted({rows, *[t for t in range(8, rows, 8) if rows % t == 0]},
                   reverse=True)
    for t in cands:
        if per_pixel_f32 * 4 * t * lanes <= budget_bytes:
            return t
    return cands[-1]


# -----------------------------------------------------------------------------
# Kernel 1: depth downsampling ('mean' method) + valid mask + sparse log depth
# -----------------------------------------------------------------------------
def _preprocess_kernel(dep_ref, dep_down_ref, mask_ref, logd_ref):
    # dep_ref block: (1, r*r, tR, LW) — pooling taps on the leading axis,
    # trailing (sublane, lane) dims are the lane-dense plane view.
    _, rr, _, _ = dep_ref.shape
    t0 = dep_ref[0, 0]
    sum_d = t0
    cnt = (t0 > 0.0).astype(jnp.float32)
    for k in range(1, rr):                      # unrolled r*r tap loop: VPU adds
        t = dep_ref[0, k]
        sum_d = sum_d + t
        cnt = cnt + (t > 0.0).astype(jnp.float32)
    has = cnt > 0.0
    # avg_pool(dep)/avg_pool(valid) where valid, plain avg_pool otherwise
    dep_down = jnp.where(has, sum_d / jnp.where(has, cnt, 1.0),
                         sum_d * (1.0 / rr))
    vmask = has.astype(jnp.float32)
    # depth_activation_format == 'exp' -> log depth; zero where mask == 0
    logd = jnp.where(has, jnp.log(jnp.where(has, dep_down, 1.0)), 0.0)
    dep_down_ref[0] = dep_down
    mask_ref[0] = vmask
    logd_ref[0] = logd


def preprocess_depth(dep, r):
    """dep: (N, 1, H, W) -> dep_down, valid_mask, sparse_log_depth at (N,1,H/r,W/r)."""
    N, _, H, W = dep.shape
    Hl, Wl = H // r, W // r
    rr = r * r
    R, LW = _plane_view(Hl, Wl)
    # glue: gather the r x r pooling taps onto a leading axis and flatten the
    # low-res plane into the lane-dense (rows, lanes) view.
    dep_t = jnp.transpose(dep[:, 0].reshape(N, Hl, r, Wl, r), (0, 2, 4, 1, 3))
    dep_t = dep_t.reshape(N, rr, R, LW).astype(jnp.float32)
    tR = _pick_row_tile(R, LW, per_pixel_f32=2 * (rr + 3))
    n_t = R // tR
    outs = pl.pallas_call(
        _preprocess_kernel,
        out_shape=tuple(
            jax.ShapeDtypeStruct((N, R, LW), jnp.float32) for _ in range(3)),
        grid=(N, n_t),
        in_specs=[pl.BlockSpec((1, rr, tR, LW), lambda n, t: (n, 0, t, 0))],
        out_specs=tuple(
            pl.BlockSpec((1, tR, LW), lambda n, t: (n, t, 0)) for _ in range(3)),
        compiler_params=pltpu.CompilerParams(
            dimension_semantics=("parallel", "parallel")),
    )(dep_t)
    dep_down, vmask, logd = (o.reshape(N, 1, Hl, Wl) for o in outs)
    return dep_down, vmask, logd


# -----------------------------------------------------------------------------
# Kernel 2: convex-combination upsampling (upsample_depth) + exp activation
# -----------------------------------------------------------------------------
def _upsample_kernel(mask_ref, nbr_ref, out_ref):
    # mask_ref: (1, 9, r*r, tR, LW)  nbr_ref: (1, 9, tR, LW)
    # out_ref : (1, r*r, tR, LW) = exp( sum_k softmax_k(mask) * nbr_k )
    r2 = out_ref.shape[1]
    nbrs = [nbr_ref[0, k] for k in range(9)]       # hoisted: shared by all phases
    for q in range(r2):                            # unrolled over (i, j) phases
        taps = [mask_ref[0, k, q] for k in range(9)]
        m_max = taps[0]
        for k in range(1, 9):
            m_max = jnp.maximum(m_max, taps[k])
        e0 = jnp.exp(taps[0] - m_max)              # EUP
        den = e0
        acc = e0 * nbrs[0]
        for k in range(1, 9):                      # unrolled 3x3 taps
            e = jnp.exp(taps[k] - m_max)
            den = den + e
            acc = acc + e * nbrs[k]
        # one normalization (EUP reciprocal) + exp activation
        out_ref[0, q] = jnp.exp(acc * pl.reciprocal(den, approx=True))


def upsample_depth_pallas(log_depth, up_mask, r):
    """log_depth: (N,1,Hl,Wl), up_mask: (N, 9*r*r, Hl, Wl) -> exp depth (N,1,rHl,rWl)."""
    N, _, Hl, Wl = log_depth.shape
    r2 = r * r
    R, LW = _plane_view(Hl, Wl)
    mask5 = up_mask.reshape(N, 9, r2, R, LW).astype(jnp.float32)
    # glue: materialize the 9 zero-padded 3x3 unfold neighbour planes in XLA so
    # the kernel is pure element-wise work on lane-dense tiles.
    dpad = jnp.pad(log_depth[:, 0], ((0, 0), (1, 1), (1, 1)))
    nbrs = jnp.stack(
        [dpad[:, dy:dy + Hl, dx:dx + Wl] for dy in range(3) for dx in range(3)],
        axis=1).reshape(N, 9, R, LW).astype(jnp.float32)
    tR = _pick_row_tile(R, LW, per_pixel_f32=2 * (9 * r2 + 9 + r2))
    n_t = R // tR
    out = pl.pallas_call(
        _upsample_kernel,
        out_shape=jax.ShapeDtypeStruct((N, r2, R, LW), jnp.float32),
        grid=(N, n_t),
        in_specs=[
            pl.BlockSpec((1, 9, r2, tR, LW), lambda n, t: (n, 0, 0, t, 0)),
            pl.BlockSpec((1, 9, tR, LW), lambda n, t: (n, 0, t, 0)),
        ],
        out_specs=pl.BlockSpec((1, r2, tR, LW), lambda n, t: (n, 0, t, 0)),
        compiler_params=pltpu.CompilerParams(
            dimension_semantics=("parallel", "parallel")),
    )(mask5, nbrs)
    # glue: depth-to-space (pixel shuffle) kept in XLA; the (r, r) interleave
    # would otherwise require lane/sublane relayouts inside the kernel.
    out = out.reshape(N, 1, r, r, Hl, Wl)
    out = jnp.transpose(out, (0, 1, 4, 2, 5, 3)).reshape(N, 1, r * Hl, r * Wl)
    return out


# -----------------------------------------------------------------------------
# whitening: tiny per-sample mean-subtract; left to XLA (fuses with GRU ops),
# a dedicated pallas_call per GRU iteration was pure launch overhead.
# -----------------------------------------------------------------------------
def whiten(x):
    return x - jnp.mean(x, axis=(1, 2, 3), keepdims=True)


# -----------------------------------------------------------------------------
# Forward driver (mirrors OGNIDC.forward structure)
# -----------------------------------------------------------------------------
class Args:
    GRU_iters = 2
    gru_hidden_dim = 8
    gru_context_dim = 8
    prop_time = 0                      # no SPN refinement path
    backbone_output_downsample_rate = 4
    depth_downsample_method = "mean"
    depth_activation_format = "exp"
    optim_layer_input_clamp = 10.0


def ognidc_forward(sample, params, args):
    dep = sample["dep"]
    r = args.backbone_output_downsample_rate

    # ---- preprocessing (Pallas kernel 1) ----
    dep_down, valid_sparse_mask, sparse_log_depth = preprocess_depth(dep, r)

    # TODO(synk): Backbone(rgb, dep_original) is not provided; use deterministic
    # synthetic context / confidences instead of the real encoder features.
    context = params["context"]                         # (N, hdim+cdim, Hl, Wl)
    confidence_input = jnp.ones_like(dep_down)

    net = jnp.tanh(context[:, : args.gru_hidden_dim])
    inp = jax.nn.relu(context[:, args.gru_hidden_dim:])

    # initialize_depth
    log_depth_pred = jnp.zeros_like(dep_down)
    log_depth_grad_pred_init = jnp.zeros_like(dep_down).repeat(2, axis=1)
    log_depth_grad_pred = log_depth_grad_pred_init

    log_depth_grad_predictions = []
    confidence_predictions = []
    depth_predictions_up = []
    depth_predictions_up_initial = []

    for itr in range(args.GRU_iters):
        # whitening (plain jnp, see comment above)
        log_depth_pred_whitened = whiten(log_depth_pred)

        # TODO(synk): BasicUpdateBlock (ConvGRU) is not provided; stand in with
        # a zero gradient update, unit confidence and the given upsampling mask.
        _ = (net, inp, log_depth_pred_whitened)
        delta_log_depth_grad = jnp.zeros_like(log_depth_grad_pred)
        confidence_depth_grad = jnp.ones_like(log_depth_grad_pred)
        up_mask = params["up_mask"]

        log_depth_grad_pred = log_depth_grad_pred + delta_log_depth_grad
        thres = args.optim_layer_input_clamp
        log_depth_grad_pred = jnp.clip(log_depth_grad_pred, -thres, thres)

        # TODO(synk): DepthGradOptimLayer (CG-based integration solver) is not
        # provided; stand in with the masked sparse log-depth observation.
        log_depth_pred = sparse_log_depth * valid_sparse_mask

        log_depth_grad_predictions.append(log_depth_grad_pred)
        confidence_predictions.append(confidence_depth_grad)

        # convex upsampling + exp (Pallas kernel 2)
        depth_pred_up_init = upsample_depth_pallas(log_depth_pred, up_mask, r)
        depth_predictions_up_initial.append(depth_pred_up_init)

        # prop_time == 0 -> no NLSPN/DySPN refinement
        depth_pred_up_final = depth_pred_up_init
        depth_predictions_up.append(depth_pred_up_final)

    return {
        "pred": depth_predictions_up[-1],
        "pred_inter": depth_predictions_up,
        "depth_predictions_up_initial": depth_predictions_up_initial,
        "log_depth_grad_inter": log_depth_grad_predictions,
        "log_depth_grad_init": log_depth_grad_pred_init,
        "confidence_depth_grad_inter": confidence_predictions,
        "dep_down": dep_down,
        "confidence_input": confidence_input,
        "dyspn_offset": None,
    }


# -----------------------------------------------------------------------------
# pure-JAX references (correctness checks for the two Pallas kernels)
# -----------------------------------------------------------------------------
def _preprocess_ref(dep, r):
    N, _, H, W = dep.shape
    Hl, Wl = H // r, W // r
    d = dep[:, 0].reshape(N, Hl, r, Wl, r)
    valid = (d > 0.0).astype(jnp.float32)
    dpool = d.mean(axis=(2, 4))
    vpool = valid.mean(axis=(2, 4))
    has = vpool > 0.0
    dep_down = jnp.where(has, dpool / jnp.where(has, vpool, 1.0), dpool)
    vmask = has.astype(jnp.float32)
    logd = jnp.where(has, jnp.log(jnp.where(has, dep_down, 1.0)), 0.0)
    return dep_down[:, None], vmask[:, None], logd[:, None]


def _upsample_ref(log_depth, up_mask, r):
    N, _, Hl, Wl = log_depth.shape
    m = jax.nn.softmax(up_mask.reshape(N, 1, 9, r, r, Hl, Wl), axis=2)
    dpad = jnp.pad(log_depth, ((0, 0), (0, 0), (1, 1), (1, 1)))
    nbr = jnp.stack(
        [dpad[:, :, dy:dy + Hl, dx:dx + Wl] for dy in range(3) for dx in range(3)],
        axis=2)                                              # (N,1,9,Hl,Wl)
    up = jnp.sum(m * nbr[:, :, :, None, None], axis=2)        # (N,1,r,r,Hl,Wl)
    up = jnp.transpose(up, (0, 1, 4, 2, 5, 3)).reshape(N, 1, r * Hl, r * Wl)
    return jnp.exp(up)


if __name__ == "__main__":
    args = Args()
    N, H, W = 2, 32, 32
    r = args.backbone_output_downsample_rate
    Hl, Wl = H // r, W // r

    key = jax.random.PRNGKey(0)
    k_rgb, k_dep, k_keep, k_ctx, k_mask = jax.random.split(key, 5)

    rgb = jax.random.uniform(k_rgb, (N, 3, H, W), jnp.float32)
    # sparse depth: positive depths kept with ~10% probability, zeros elsewhere
    raw_depth = jax.random.uniform(k_dep, (N, 1, H, W), jnp.float32, 1.0, 10.0)
    keep = (jax.random.uniform(k_keep, (N, 1, H, W)) < 0.1).astype(jnp.float32)
    dep = raw_depth * keep

    params = {
        "context": 0.5
        * jax.random.normal(
            k_ctx, (N, args.gru_hidden_dim + args.gru_context_dim, Hl, Wl), jnp.float32
        ),
        "up_mask": 0.1
        * jax.random.normal(k_mask, (N, 9 * r * r, Hl, Wl), jnp.float32),
    }

    sample = {"rgb": rgb, "dep": dep, "K": jnp.eye(3, dtype=jnp.float32)}

    # --- kernel correctness checks against pure-JAX references ---
    dd_p, vm_p, ld_p = preprocess_depth(dep, r)
    dd_r, vm_r, ld_r = _preprocess_ref(dep, r)
    jax.block_until_ready(dd_p)
    assert bool(jnp.allclose(dd_p, dd_r, rtol=1e-5, atol=1e-6))
    assert bool(jnp.allclose(vm_p, vm_r, rtol=1e-5, atol=1e-6))
    assert bool(jnp.allclose(ld_p, ld_r, rtol=1e-5, atol=1e-6))

    logd_test = ld_p * vm_p
    up_p = upsample_depth_pallas(logd_test, params["up_mask"], r)
    up_r = _upsample_ref(logd_test, params["up_mask"], r)
    jax.block_until_ready(up_p)
    # approx reciprocal in the softmax normalization -> loose tolerance
    assert bool(jnp.allclose(up_p, up_r, rtol=5e-2, atol=1e-3))

    # --- full forward ---
    out = ognidc_forward(sample, params, args)
    jax.block_until_ready(out["pred"])
    assert out["pred"].shape == (N, 1, H, W)
    assert out["dep_down"].shape == (N, 1, Hl, Wl)
    print("KERNEL_OK")
</pallas_src>

<mosaic_0001>
module attributes {stable_mosaic.version = 11 : i64} {
  func.func @_preprocess_kernel(%arg0: i32, %arg1: i32, %arg2: memref<1x16x8x8xf32, #tpu.memory_space<vmem>>, %arg3: memref<1x8x8xf32, #tpu.memory_space<vmem>>, %arg4: memref<1x8x8xf32, #tpu.memory_space<vmem>>, %arg5: memref<1x8x8xf32, #tpu.memory_space<vmem>>) attributes {dimension_semantics = [#tpu.dimension_semantics<parallel>, #tpu.dimension_semantics<parallel>], iteration_bounds = array<i64: 2, 1>, scalar_prefetch = 0 : i64, scratch_operands = 0 : i64, tpu.core_type = #tpu.core_type<tc>, window_params = [{transform_indices = @transform_0, window_bounds = array<i64: 1, 16, 8, 8>}, {transform_indices = @transform_1, window_bounds = array<i64: 1, 8, 8>}, {transform_indices = @transform_2, window_bounds = array<i64: 1, 8, 8>}, {transform_indices = @transform_3, window_bounds = array<i64: 1, 8, 8>}]} {
    %c0 = arith.constant 0 : index
    %c0_0 = arith.constant 0 : index
    %c0_1 = arith.constant 0 : index
    %c0_2 = arith.constant 0 : index
    %0 = vector.load %arg2[%c0, %c0_0, %c0_1, %c0_2] : memref<1x16x8x8xf32, #tpu.memory_space<vmem>>, vector<1x1x8x8xf32>
    %1 = vector.shape_cast %0 : vector<1x1x8x8xf32> to vector<8x8xf32>
    %cst = arith.constant 0.000000e+00 : f32
    %2 = vector.broadcast %cst : f32 to vector<8x8xf32>
    %3 = arith.cmpf ogt, %1, %2 : vector<8x8xf32>
    %4 = arith.extui %3 : vector<8x8xi1> to vector<8x8xi32>
    %5 = arith.sitofp %4 : vector<8x8xi32> to vector<8x8xf32>
    %c0_3 = arith.constant 0 : index
    %c1 = arith.constant 1 : index
    %c0_4 = arith.constant 0 : index
    %c0_5 = arith.constant 0 : index
    %6 = vector.load %arg2[%c0_3, %c1, %c0_4, %c0_5] : memref<1x16x8x8xf32, #tpu.memory_space<vmem>>, vector<1x1x8x8xf32>
    %7 = vector.shape_cast %6 : vector<1x1x8x8xf32> to vector<8x8xf32>
    %8 = arith.addf %1, %7 : vector<8x8xf32>
    %cst_6 = arith.constant 0.000000e+00 : f32
    %9 = vector.broadcast %cst_6 : f32 to vector<8x8xf32>
    %10 = arith.cmpf ogt, %7, %9 : vector<8x8xf32>
    %11 = arith.extui %10 : vector<8x8xi1> to vector<8x8xi32>
    %12 = arith.sitofp %11 : vector<8x8xi32> to vector<8x8xf32>
    %13 = arith.addf %5, %12 : vector<8x8xf32>
    %c0_7 = arith.constant 0 : index
    %c2 = arith.constant 2 : index
    %c0_8 = arith.constant 0 : index
    %c0_9 = arith.constant 0 : index
    %14 = vector.load %arg2[%c0_7, %c2, %c0_8, %c0_9] : memref<1x16x8x8xf32, #tpu.memory_space<vmem>>, vector<1x1x8x8xf32>
    %15 = vector.shape_cast %14 : vector<1x1x8x8xf32> to vector<8x8xf32>
    %16 = arith.addf %8, %15 : vector<8x8xf32>
    %cst_10 = arith.constant 0.000000e+00 : f32
    %17 = vector.broadcast %cst_10 : f32 to vector<8x8xf32>
    %18 = arith.cmpf ogt, %15, %17 : vector<8x8xf32>
    %19 = arith.extui %18 : vector<8x8xi1> to vector<8x8xi32>
    %20 = arith.sitofp %19 : vector<8x8xi32> to vector<8x8xf32>
    %21 = arith.addf %13, %20 : vector<8x8xf32>
    %c0_11 = arith.constant 0 : index
    %c3 = arith.constant 3 : index
    %c0_12 = arith.constant 0 : index
    %c0_13 = arith.constant 0 : index
    %22 = vector.load %arg2[%c0_11, %c3, %c0_12, %c0_13] : memref<1x16x8x8xf32, #tpu.memory_space<vmem>>, vector<1x1x8x8xf32>
    %23 = vector.shape_cast %22 : vector<1x1x8x8xf32> to vector<8x8xf32>
    %24 = arith.addf %16, %23 : vector<8x8xf32>
    %cst_14 = arith.constant 0.000000e+00 : f32
    %25 = vector.broadcast %cst_14 : f32 to vector<8x8xf32>
    %26 = arith.cmpf ogt, %23, %25 : vector<8x8xf32>
    %27 = arith.extui %26 : vector<8x8xi1> to vector<8x8xi32>
    %28 = arith.sitofp %27 : vector<8x8xi32> to vector<8x8xf32>
    %29 = arith.addf %21, %28 : vector<8x8xf32>
    %c0_15 = arith.constant 0 : index
    %c4 = arith.constant 4 : index
    %c0_16 = arith.constant 0 : index
    %c0_17 = arith.constant 0 : index
    %30 = vector.load %arg2[%c0_15, %c4, %c0_16, %c0_17] : memref<1x16x8x8xf32, #tpu.memory_space<vmem>>, vector<1x1x8x8xf32>
    %31 = vector.shape_cast %30 : vector<1x1x8x8xf32> to vector<8x8xf32>
    %32 = arith.addf %24, %31 : vector<8x8xf32>
    %cst_18 = arith.constant 0.000000e+00 : f32
    %33 = vector.broadcast %cst_18 : f32 to vector<8x8xf32>
    %34 = arith.cmpf ogt, %31, %33 : vector<8x8xf32>
    %35 = arith.extui %34 : vector<8x8xi1> to vector<8x8xi32>
    %36 = arith.sitofp %35 : vector<8x8xi32> to vector<8x8xf32>
    %37 = arith.addf %29, %36 : vector<8x8xf32>
    %c0_19 = arith.constant 0 : index
    %c5 = arith.constant 5 : index
    %c0_20 = arith.constant 0 : index
    %c0_21 = arith.constant 0 : index
    %38 = vector.load %arg2[%c0_19, %c5, %c0_20, %c0_21] : memref<1x16x8x8xf32, #tpu.memory_space<vmem>>, vector<1x1x8x8xf32>
    %39 = vector.shape_cast %38 : vector<1x1x8x8xf32> to vector<8x8xf32>
    %40 = arith.addf %32, %39 : vector<8x8xf32>
    %cst_22 = arith.constant 0.000000e+00 : f32
    %41 = vector.broadcast %cst_22 : f32 to vector<8x8xf32>
    %42 = arith.cmpf ogt, %39, %41 : vector<8x8xf32>
    %43 = arith.extui %42 : vector<8x8xi1> to vector<8x8xi32>
    %44 = arith.sitofp %43 : vector<8x8xi32> to vector<8x8xf32>
    %45 = arith.addf %37, %44 : vector<8x8xf32>
    %c0_23 = arith.constant 0 : index
    %c6 = arith.constant 6 : index
    %c0_24 = arith.constant 0 : index
    %c0_25 = arith.constant 0 : index
    %46 = vector.load %arg2[%c0_23, %c6, %c0_24, %c0_25] : memref<1x16x8x8xf32, #tpu.memory_space<vmem>>, vector<1x1x8x8xf32>
    %47 = vector.shape_cast %46 : vector<1x1x8x8xf32> to vector<8x8xf32>
    %48 = arith.addf %40, %47 : vector<8x8xf32>
    %cst_26 = arith.constant 0.000000e+00 : f32
    %49 = vector.broadcast %cst_26 : f32 to vector<8x8xf32>
    %50 = arith.cmpf ogt, %47, %49 : vector<8x8xf32>
    %51 = arith.extui %50 : vector<8x8xi1> to vector<8x8xi32>
    %52 = arith.sitofp %51 : vector<8x8xi32> to vector<8x8xf32>
    %53 = arith.addf %45, %52 : vector<8x8xf32>
    %c0_27 = arith.constant 0 : index
    %c7 = arith.constant 7 : index
    %c0_28 = arith.constant 0 : index
    %c0_29 = arith.constant 0 : index
    %54 = vector.load %arg2[%c0_27, %c7, %c0_28, %c0_29] : memref<1x16x8x8xf32, #tpu.memory_space<vmem>>, vector<1x1x8x8xf32>
    %55 = vector.shape_cast %54 : vector<1x1x8x8xf32> to vector<8x8xf32>
    %56 = arith.addf %48, %55 : vector<8x8xf32>
    %cst_30 = arith.constant 0.000000e+00 : f32
    %57 = vector.broadcast %cst_30 : f32 to vector<8x8xf32>
    %58 = arith.cmpf ogt, %55, %57 : vector<8x8xf32>
    %59 = arith.extui %58 : vector<8x8xi1> to vector<8x8xi32>
    %60 = arith.sitofp %59 : vector<8x8xi32> to vector<8x8xf32>
    %61 = arith.addf %53, %60 : vector<8x8xf32>
    %c0_31 = arith.constant 0 : index
    %c8 = arith.constant 8 : index
    %c0_32 = arith.constant 0 : index
    %c0_33 = arith.constant 0 : index
    %62 = vector.load %arg2[%c0_31, %c8, %c0_32, %c0_33] : memref<1x16x8x8xf32, #tpu.memory_space<vmem>>, vector<1x1x8x8xf32>
    %63 = vector.shape_cast %62 : vector<1x1x8x8xf32> to vector<8x8xf32>
    %64 = arith.addf %56, %63 : vector<8x8xf32>
    %cst_34 = arith.constant 0.000000e+00 : f32
    %65 = vector.broadcast %cst_34 : f32 to vector<8x8xf32>
    %66 = arith.cmpf ogt, %63, %65 : vector<8x8xf32>
    %67 = arith.extui %66 : vector<8x8xi1> to vector<8x8xi32>
    %68 = arith.sitofp %67 : vector<8x8xi32> to vector<8x8xf32>
    %69 = arith.addf %61, %68 : vector<8x8xf32>
    %c0_35 = arith.constant 0 : index
    %c9 = arith.constant 9 : index
    %c0_36 = arith.constant 0 : index
    %c0_37 = arith.constant 0 : index
    %70 = vector.load %arg2[%c0_35, %c9, %c0_36, %c0_37] : memref<1x16x8x8xf32, #tpu.memory_space<vmem>>, vector<1x1x8x8xf32>
    %71 = vector.shape_cast %70 : vector<1x1x8x8xf32> to vector<8x8xf32>
    %72 = arith.addf %64, %71 : vector<8x8xf32>
    %cst_38 = arith.constant 0.000000e+00 : f32
    %73 = vector.broadcast %cst_38 : f32 to vector<8x8xf32>
    %74 = arith.cmpf ogt, %71, %73 : vector<8x8xf32>
    %75 = arith.extui %74 : vector<8x8xi1> to vector<8x8xi32>
    %76 = arith.sitofp %75 : vector<8x8xi32> to vector<8x8xf32>
    %77 = arith.addf %69, %76 : vector<8x8xf32>
    %c0_39 = arith.constant 0 : index
    %c10 = arith.constant 10 : index
    %c0_40 = arith.constant 0 : index
    %c0_41 = arith.constant 0 : index
    %78 = vector.load %arg2[%c0_39, %c10, %c0_40, %c0_41] : memref<1x16x8x8xf32, #tpu.memory_space<vmem>>, vector<1x1x8x8xf32>
    %79 = vector.shape_cast %78 : vector<1x1x8x8xf32> to vector<8x8xf32>
    %80 = arith.addf %72, %79 : vector<8x8xf32>
    %cst_42 = arith.constant 0.000000e+00 : f32
    %81 = vector.broadcast %cst_42 : f32 to vector<8x8xf32>
    %82 = arith.cmpf ogt, %79, %81 : vector<8x8xf32>
    %83 = arith.extui %82 : vector<8x8xi1> to vector<8x8xi32>
    %84 = arith.sitofp %83 : vector<8x8xi32> to vector<8x8xf32>
    %85 = arith.addf %77, %84 : vector<8x8xf32>
    %c0_43 = arith.constant 0 : index
    %c11 = arith.constant 11 : index
    %c0_44 = arith.constant 0 : index
    %c0_45 = arith.constant 0 : index
    %86 = vector.load %arg2[%c0_43, %c11, %c0_44, %c0_45] : memref<1x16x8x8xf32, #tpu.memory_space<vmem>>, vector<1x1x8x8xf32>
    %87 = vector.shape_cast %86 : vector<1x1x8x8xf32> to vector<8x8xf32>
    %88 = arith.addf %80, %87 : vector<8x8xf32>
    %cst_46 = arith.constant 0.000000e+00 : f32
    %89 = vector.broadcast %cst_46 : f32 to vector<8x8xf32>
    %90 = arith.cmpf ogt, %87, %89 : vector<8x8xf32>
    %91 = arith.extui %90 : vector<8x8xi1> to vector<8x8xi32>
    %92 = arith.sitofp %91 : vector<8x8xi32> to vector<8x8xf32>
    %93 = arith.addf %85, %92 : vector<8x8xf32>
    %c0_47 = arith.constant 0 : index
    %c12 = arith.constant 12 : index
    %c0_48 = arith.constant 0 : index
    %c0_49 = arith.constant 0 : index
    %94 = vector.load %arg2[%c0_47, %c12, %c0_48, %c0_49] : memref<1x16x8x8xf32, #tpu.memory_space<vmem>>, vector<1x1x8x8xf32>
    %95 = vector.shape_cast %94 : vector<1x1x8x8xf32> to vector<8x8xf32>
    %96 = arith.addf %88, %95 : vector<8x8xf32>
    %cst_50 = arith.constant 0.000000e+00 : f32
    %97 = vector.broadcast %cst_50 : f32 to vector<8x8xf32>
    %98 = arith.cmpf ogt, %95, %97 : vector<8x8xf32>
    %99 = arith.extui %98 : vector<8x8xi1> to vector<8x8xi32>
    %100 = arith.sitofp %99 : vector<8x8xi32> to vector<8x8xf32>
    %101 = arith.addf %93, %100 : vector<8x8xf32>
    %c0_51 = arith.constant 0 : index
    %c13 = arith.constant 13 : index
    %c0_52 = arith.constant 0 : index
    %c0_53 = arith.constant 0 : index
    %102 = vector.load %arg2[%c0_51, %c13, %c0_52, %c0_53] : memref<1x16x8x8xf32, #tpu.memory_space<vmem>>, vector<1x1x8x8xf32>
    %103 = vector.shape_cast %102 : vector<1x1x8x8xf32> to vector<8x8xf32>
    %104 = arith.addf %96, %103 : vector<8x8xf32>
    %cst_54 = arith.constant 0.000000e+00 : f32
    %105 = vector.broadcast %cst_54 : f32 to vector<8x8xf32>
    %106 = arith.cmpf ogt, %103, %105 : vector<8x8xf32>
    %107 = arith.extui %106 : vector<8x8xi1> to vector<8x8xi32>
    %108 = arith.sitofp %107 : vector<8x8xi32> to vector<8x8xf32>
    %109 = arith.addf %101, %108 : vector<8x8xf32>
    %c0_55 = arith.constant 0 : index
    %c14 = arith.constant 14 : index
    %c0_56 = arith.constant 0 : index
    %c0_57 = arith.constant 0 : index
    %110 = vector.load %arg2[%c0_55, %c14, %c0_56, %c0_57] : memref<1x16x8x8xf32, #tpu.memory_space<vmem>>, vector<1x1x8x8xf32>
    %111 = vector.shape_cast %110 : vector<1x1x8x8xf32> to vector<8x8xf32>
    %112 = arith.addf %104, %111 : vector<8x8xf32>
    %cst_58 = arith.constant 0.000000e+00 : f32
    %113 = vector.broadcast %cst_58 : f32 to vector<8x8xf32>
    %114 = arith.cmpf ogt, %111, %113 : vector<8x8xf32>
    %115 = arith.extui %114 : vector<8x8xi1> to vector<8x8xi32>
    %116 = arith.sitofp %115 : vector<8x8xi32> to vector<8x8xf32>
    %117 = arith.addf %109, %116 : vector<8x8xf32>
    %c0_59 = arith.constant 0 : index
    %c15 = arith.constant 15 : index
    %c0_60 = arith.constant 0 : index
    %c0_61 = arith.constant 0 : index
    %118 = vector.load %arg2[%c0_59, %c15, %c0_60, %c0_61] : memref<1x16x8x8xf32, #tpu.memory_space<vmem>>, vector<1x1x8x8xf32>
    %119 = vector.shape_cast %118 : vector<1x1x8x8xf32> to vector<8x8xf32>
    %120 = arith.addf %112, %119 : vector<8x8xf32>
    %cst_62 = arith.constant 0.000000e+00 : f32
    %121 = vector.broadcast %cst_62 : f32 to vector<8x8xf32>
    %122 = arith.cmpf ogt, %119, %121 : vector<8x8xf32>
    %123 = arith.extui %122 : vector<8x8xi1> to vector<8x8xi32>
    %124 = arith.sitofp %123 : vector<8x8xi32> to vector<8x8xf32>
    %125 = arith.addf %117, %124 : vector<8x8xf32>
    %cst_63 = arith.constant 0.000000e+00 : f32
    %126 = vector.broadcast %cst_63 : f32 to vector<8x8xf32>
    %127 = arith.cmpf ogt, %125, %126 : vector<8x8xf32>
    %cst_64 = arith.constant 1.000000e+00 : f32
    %128 = vector.broadcast %cst_64 : f32 to vector<8x8xf32>
    %129 = arith.select %127, %125, %128 : vector<8x8xi1>, vector<8x8xf32>
    %130 = arith.divf %120, %129 : vector<8x8xf32>
    %cst_65 = arith.constant 6.250000e-02 : f32
    %131 = vector.broadcast %cst_65 : f32 to vector<8x8xf32>
    %132 = arith.mulf %120, %131 : vector<8x8xf32>
    %133 = arith.select %127, %130, %132 : vector<8x8xi1>, vector<8x8xf32>
    %134 = arith.extui %127 : vector<8x8xi1> to vector<8x8xi32>
    %135 = arith.sitofp %134 : vector<8x8xi32> to vector<8x8xf32>
    %cst_66 = arith.constant 1.000000e+00 : f32
    %136 = vector.broadcast %cst_66 : f32 to vector<8x8xf32>
    %137 = arith.select %127, %133, %136 : vector<8x8xi1>, vector<8x8xf32>
    %138 = math.log %137 : vector<8x8xf32>
    %cst_67 = arith.constant 0.000000e+00 : f32
    %139 = vector.broadcast %cst_67 : f32 to vector<8x8xf32>
    %140 = arith.select %127, %138, %139 : vector<8x8xi1>, vector<8x8xf32>
    %c0_68 = arith.constant 0 : index
    %c0_69 = arith.constant 0 : index
    %c0_70 = arith.constant 0 : index
    %141 = vector.load %arg3[%c0_68, %c0_69, %c0_70] : memref<1x8x8xf32, #tpu.memory_space<vmem>>, vector<1x8x8xf32>
    %142 = vector.shape_cast %141 : vector<1x8x8xf32> to vector<8x8xf32>
    %143 = vector.shape_cast %133 : vector<8x8xf32> to vector<1x8x8xf32>
    tpu.vector_store %arg3[%c0_68, %c0_69, %c0_70], %143 {strides = array<i32>} : memref<1x8x8xf32, #tpu.memory_space<vmem>>, vector<1x8x8xf32>,
    %c0_71 = arith.constant 0 : index
    %c0_72 = arith.constant 0 : index
    %c0_73 = arith.constant 0 : index
    %144 = vector.load %arg4[%c0_71, %c0_72, %c0_73] : memref<1x8x8xf32, #tpu.memory_space<vmem>>, vector<1x8x8xf32>
    %145 = vector.shape_cast %144 : vector<1x8x8xf32> to vector<8x8xf32>
    %146 = vector.shape_cast %135 : vector<8x8xf32> to vector<1x8x8xf32>
    tpu.vector_store %arg4[%c0_71, %c0_72, %c0_73], %146 {strides = array<i32>} : memref<1x8x8xf32, #tpu.memory_space<vmem>>, vector<1x8x8xf32>,
    %c0_74 = arith.constant 0 : index
    %c0_75 = arith.constant 0 : index
    %c0_76 = arith.constant 0 : index
    %147 = vector.load %arg5[%c0_74, %c0_75, %c0_76] : memref<1x8x8xf32, #tpu.memory_space<vmem>>, vector<1x8x8xf32>
    %148 = vector.shape_cast %147 : vector<1x8x8xf32> to vector<8x8xf32>
    %149 = vector.shape_cast %140 : vector<8x8xf32> to vector<1x8x8xf32>
    tpu.vector_store %arg5[%c0_74, %c0_75, %c0_76], %149 {strides = array<i32>} : memref<1x8x8xf32, #tpu.memory_space<vmem>>, vector<1x8x8xf32>,
    return
  }
  func.func @transform_0(%arg0: i32, %arg1: i32) -> (i32, i32, i32, i32) {
    %c0_i32 = arith.constant 0 : i32
    %c0_i32_0 = arith.constant 0 : i32
    %c0_i32_1 = arith.constant 0 : i32
    return %arg0, %c0_i32, %arg1, %c0_i32_0 : i32, i32, i32, i32
  }
  func.func @transform_1(%arg0: i32, %arg1: i32) -> (i32, i32, i32) {
    %c0_i32 = arith.constant 0 : i32
    %c0_i32_0 = arith.constant 0 : i32
    return %arg0, %arg1, %c0_i32 : i32, i32, i32
  }
  func.func @transform_2(%arg0: i32, %arg1: i32) -> (i32, i32, i32) {
    %c0_i32 = arith.constant 0 : i32
    %c0_i32_0 = arith.constant 0 : i32
    return %arg0, %arg1, %c0_i32 : i32, i32, i32
  }
  func.func @transform_3(%arg0: i32, %arg1: i32) -> (i32, i32, i32) {
    %c0_i32 = arith.constant 0 : i32
    %c0_i32_0 = arith.constant 0 : i32
    return %arg0, %arg1, %c0_i32 : i32, i32, i32
  }
}

</mosaic_0001>

<bundles_post_ra>
// kernel: tpu_custom_call.1
= control target key start
LH: loop header
LB: loop body
LE: loop exit
PB: predicated region body
PF: predicated region fallthrough
CT: control target
= control target key end

     0   :  { %9 = vsyncpa [#allocation3], 0  ;;  %s1039_s0 = inlined_call_operand.vmem [shape: f32[2,16,8,8], index: 0, kind: input, shape index: {}]   ;;  %s1040_s1 = inlined_call_operand.hbm [shape: f32[2,8,8], index: 1, kind: output, shape index: {0}]   ;;  %s1041_s2 = inlined_call_operand.hbm [shape: f32[2,8,8], index: 2, kind: output, shape index: {1}]   ;;  %s1042_s3 = inlined_call_operand.hbm [shape: f32[2,8,8], index: 3, kind: output, shape index: {2}]  }
   0x1   :  { %11 = vsyncpa [#allocation3 + $0x1], 0 }
   0x2   :  { %12 = vsyncpa [#allocation5], 0 }
   0x3   :  { %14 = vsyncpa [#allocation5 + $0x1], 0  ;;  %s832_s12 = smov 0   ;;  %s834_s13 = smov 0  }
   0x4   :  { %s836_s14 = smov 0   ;;  %s838_s15 = smov 0  }
   0x5   :  { %s840_s16 = smov 0   ;;  %s842_s17 = smov 0  }
   0x6 LB: > { %s550_s18 = sadd.s32 4294967295, %s809_s17   ;;  %s1043_s19 = sadd.s32 4294967294, %s809_s17   ;;  %s809_s17 = sphi %s842_s17, %s20_s17   ;;  %s805_s16 = sphi %s840_s16, %s1051_s16   ;;  %s801_s15 = sphi %s838_s15, %s1050_s15   ;;  %s797_s14 = sphi %s836_s14, %s1049_s14   ;;  %s793_s13 = sphi %s834_s13, %s1048_s13   ;;  %s789_s12 = sphi %s832_s12, %s1047_s12  }
   0x7   : > { %s32_s20 = sadd.s32 1, %s805_s16  ;;  %s69_s21 = sadd.s32 1, %s797_s14 }
   0x8   : > { %p34_p0 = scmp.ge.s32.totalorder %s32_s20, 2  ;;  %p79_p1 = scmp.ne.s32.totalorder %s797_s14, %s793_s13 }
   0x9   : > { %p80_p2 = scmp.eq.s32.totalorder %s550_s18, 1  ;;  %p85_p3 = scmp.ne.s32.totalorder %s793_s13, %s789_s12 }
   0xa   : > { %s1053_s20 = smov (%p34_p0, %s32_s20), 0  ;;  %p86_p5 = scmp.eq.s32.totalorder %s1043_s19, 1 }
   0xb   : > { %p874_p4 = por %p80_p2, %p79_p1  ;;  %s64_s23 = ssub.s32 %s805_s16, %s1053_s20 }
   0xc   : > { %p554_p6 = scmp.ge.s32.totalorder %s809_s17, 1  ;;  %p67_p7 = scmp.eq.s32.totalorder %s64_s23, 0 }
   0xd   : > { %p883_p8 = por %p86_p5, %p85_p3  ;;  %p171_p9 = scmp.lt.s32.totalorder %s809_s17, 3 }
   0xe   : > { %s889_s25 = scalar_select %p67_p7, %s797_s14, %s69_s21  }
   0xf   : > { %p172_p10 = pnand %p554_p6, %p171_p9 }
  0x10   : > { %p208_p11 = scmp.lt.s32.totalorder (!%p172_p10), %s801_s15, 1  ;;  %s191_s4 = sand.u32 (!%p172_p10), 1, %s793_s13  }
  0x11   : > { %175 = sbr.rel (%p172_p10) target bundleno = 98 (0x62), region = 24  ;;  %s930_s5 = sshll.u32 (!%p172_p10), %s191_s4, 3 }
  0x12   : > { %s934_s6 = sshll.u32 (!%p172_p10), %s801_s15, 3  ;;  %s200_s10 = scalar_lea.vmem (!%p172_p10), [#allocation4], %s930_s5 }
  0x13   : > { %s391_s9 = scalar_lea.hbm (!%p172_p10), %s1041_s2, %s934_s6  ;;  %s943_s11 = sshll.u32 (!%p172_p10), %s200_s10, 4  ;;  %s394_s11 = int_to_ptr.vmem [resolvable:$true] %s943_s11 }
  0x14   : > { %s395_s21 = sshll.u32 (!%p172_p10), %s391_s9, 4  ;;  %s691_s29 = scalar_lea.hbm (!%p172_p10), %s1041_s2, 16  ;;  %s396_s21 = int_to_ptr.hbm [resolvable:$true] %s395_s21 }
  0x15   : > { %s685_s23 = sshra.s32 (!%p172_p10), %s396_s21, 4  ;;  %s686_s23 = int_to_ptr.hbm [resolvable:$true] %s685_s23 }
  0x16   : > { %s209_s26 = scalar_select %p208_p11, %s801_s15, 1  ;;  %v811_v5 = vmov 0.0  }
  0x17   : > { %s947_s15 = sand.u32 1, %s550_s18   ;;  %p692_p1 = scmp.lt.s32.totalorder %s686_s23, %s1041_s2 }
  0x18   : > { %s600_s27 = sshll.u32 %s209_s26, 7  ;;  %s360_s18 = scalar_lea.sflag [#allocation5], %s947_s15 }
  0x19   : > { %s896_s30 = scalar_lea.vmem %s1039_s0, %s600_s27  ;;  %s687_s26 = scalar_lea.hbm %s686_s23, 8 }
  0x1a   : > { %v216_v0 = vld [vmem:[%s896_s30] sm:$0xff]  ;;  %v561_v1 = vld [vmem:[%s896_s30 + $0x8] sm:$0xff]  ;;  %v563_v2 = vld [vmem:[%s896_s30 + $0x10] sm:$0xff]  ;;  %p688_p12 = scmp.ne.s32.totalorder %s686_s23, %s687_s26  ;;  %p693_p2 = scmp.lt.s32.totalorder %s691_s29, %s687_s26 }
  0x1b   : > { %vm217_vm0 = vcmp.gt.f32.partialorder %v216_v0, 0.0  ;;  %vm223_vm1 = vcmp.gt.f32.partialorder %v561_v1, 0.0  ;;  %vm230_vm2 = vcmp.gt.f32.partialorder %v563_v2, 0.0  ;;  %v565_v3 = vld [vmem:[%s896_s30 + $0x18] sm:$0xff]  ;;  %v567_v4 = vld [vmem:[%s896_s30 + $0x20] sm:$0xff]  ;;  %v569_v9 = vld [vmem:[%s896_s30 + $0x28] sm:$0xff]  ;;  %v222_v16 = vadd.f32 %v561_v1, %v216_v0 }
  0x1c   : > { %v560_v6 = vsel %vm217_vm0, 1.0, %v811_v5  ;;  %v562_v7 = vsel %vm223_vm1, 1.0, %v811_v5  ;;  %v564_v8 = vsel %vm230_vm2, 1.0, %v811_v5  ;;  %vm237_vm3 = vcmp.gt.f32.partialorder %v565_v3, 0.0  ;;  %v571_v12 = vld [vmem:[%s896_s30 + $0x30] sm:$0xff]  ;;  %v573_v15 = vld [vmem:[%s896_s30 + $0x38] sm:$0xff]  ;;  %p689_p13 = pnand %p688_p12, %p874_p4  ;;  %p694_p3 = por %p693_p2, %p692_p1 }
  0x1d   : > { %v226_v10 = vadd.f32 %v562_v7, %v560_v6  ;;  %vm244_vm4 = vcmp.gt.f32.partialorder %v567_v4, 0.0  ;;  %v566_v11 = vsel %vm237_vm3, 1.0, %v811_v5  ;;  %vm251_vm5 = vcmp.gt.f32.partialorder %v569_v9, 0.0  ;;  %v575_v19 = vld [vmem:[%s896_s30 + $0x40] sm:$0xff]  ;;  %v577_v22 = vld [vmem:[%s896_s30 + $0x48] sm:$0xff]  ;;  %v579_v26 = vld [vmem:[%s896_s30 + $0x50] sm:$0xff] }
  0x1e   : > { %v568_v14 = vsel %vm244_vm4, 1.0, %v811_v5  ;;  %vm258_vm6 = vcmp.gt.f32.partialorder %v571_v12, 0.0  ;;  %v570_v18 = vsel %vm251_vm5, 1.0, %v811_v5  ;;  %vm265_vm7 = vcmp.gt.f32.partialorder %v573_v15, 0.0  ;;  %v581_v30 = vld [vmem:[%s896_s30 + $0x58] sm:$0xff]  ;;  %v583_v34 = vld [vmem:[%s896_s30 + $0x60] sm:$0xff]  ;;  %p690_p0 = pneg %p689_p13 }
  0x1f   : > { %v233_v13 = vadd.f32 %v564_v8, %v226_v10  ;;  %v572_v21 = vsel %vm258_vm6, 1.0, %v811_v5  ;;  %v229_v23 = vadd.f32 %v563_v2, %v222_v16  ;;  %vm272_vm8 = vcmp.gt.f32.partialorder %v575_v19, 0.0  ;;  %v585_v38 = vld [vmem:[%s896_s30 + $0x68] sm:$0xff]  ;;  %v587_v42 = vld [vmem:[%s896_s30 + $0x70] sm:$0xff]  ;;  %v589_v46 = vld [vmem:[%s896_s30 + $0x78] sm:$0xff] }
  0x20   : > { %v574_v25 = vsel %vm265_vm7, 1.0, %v811_v5  ;;  %vm279_vm9 = vcmp.gt.f32.partialorder %v577_v22, 0.0  ;;  %v576_v29 = vsel %vm272_vm8, 1.0, %v811_v5  ;;  %vm286_vm10 = vcmp.gt.f32.partialorder %v579_v26, 0.0  ;;  %p695_p5 = pnand %p694_p3, %p690_p0 }
  0x21   : > { %v240_v17 = vadd.f32 %v566_v11, %v233_v13  ;;  %v236_v27 = vadd.f32 %v565_v3, %v229_v23  ;;  %v578_v33 = vsel %vm279_vm9, 1.0, %v811_v5  ;;  %vm293_vm11 = vcmp.gt.f32.partialorder %v581_v30, 0.0 }
  0x22   : > { %v580_v37 = vsel %vm286_vm10, 1.0, %v811_v5  ;;  %vm300_vm12 = vcmp.gt.f32.partialorder %v583_v34, 0.0  ;;  %v582_v41 = vsel %vm293_vm11, 1.0, %v811_v5  ;;  %vm307_vm13 = vcmp.gt.f32.partialorder %v585_v38, 0.0 }
  0x23   : > { %v247_v20 = vadd.f32 %v568_v14, %v240_v17  ;;  %v243_v31 = vadd.f32 %v567_v4, %v236_v27  ;;  %v584_v45 = vsel %vm300_vm12, 1.0, %v811_v5  ;;  %vm314_vm14 = vcmp.gt.f32.partialorder %v587_v42, 0.0 }
  0x24   : > { %v586_v49 = vsel %vm307_vm13, 1.0, %v811_v5  ;;  %vm321_vm15 = vcmp.gt.f32.partialorder %v589_v46, 0.0  ;;  %v588_v52 = vsel %vm314_vm14, 1.0, %v811_v5  ;;  %vm350_vm0 = vcmask 64512  }
  0x25   : > { %v254_v24 = vadd.f32 %v570_v18, %v247_v20  ;;  %v250_v35 = vadd.f32 %v569_v9, %v243_v31  ;;  %v590_v55 = vsel %vm321_vm15, 1.0, %v811_v5 }
  0x27   : > { %v261_v28 = vadd.f32 %v572_v21, %v254_v24  ;;  %v257_v39 = vadd.f32 %v571_v12, %v250_v35 }
  0x29   : > { %v268_v32 = vadd.f32 %v574_v25, %v261_v28  ;;  %v264_v43 = vadd.f32 %v573_v15, %v257_v39 }
  0x2b   : > { %v275_v36 = vadd.f32 %v576_v29, %v268_v32  ;;  %v271_v47 = vadd.f32 %v575_v19, %v264_v43 }
  0x2d   : > { %v282_v40 = vadd.f32 %v578_v33, %v275_v36  ;;  %v278_v50 = vadd.f32 %v577_v22, %v271_v47 }
  0x2f   : > { %v289_v44 = vadd.f32 %v580_v37, %v282_v40  ;;  %v285_v54 = vadd.f32 %v579_v26, %v278_v50 }
  0x31   : > { %v296_v48 = vadd.f32 %v582_v41, %v289_v44  ;;  %v292_v58 = vadd.f32 %v581_v30, %v285_v54 }
  0x33   : > { %v303_v51 = vadd.f32 %v584_v45, %v296_v48  ;;  %v299_v61 = vadd.f32 %v583_v34, %v292_v58 }
  0x35   : > { %v310_v53 = vadd.f32 %v586_v49, %v303_v51 }
  0x37   : > { %v317_v56 = vadd.f32 %v588_v52, %v310_v53 }
  0x39   : > { %v949_v57 = vadd.f32 %v590_v55, %v317_v56 }
  0x3b   : > { %vm325_vm1 = vcmp.gt.f32.partialorder %v949_v57, 0.0 }
  0x3c   : > { %v326_v59 = vsel %vm325_vm1, %v949_v57, 1.0  ;;  %v591_v60 = vsel %vm325_vm1, 1.0, %v811_v5 }
  0x3d   : > { %667 = vrcp.f32 %v326_v59  ;;  %352 = vst.msk [vmem:[%s200_s10] sm:$0xff] %vm350_vm0, %v591_v60 }
  0x3e   : > { %698 = shalt.err (!%p695_p5)
}
  0x3f   : > { %602 = dma.vmem_to_hbm [thread:$0]  (%p874_p4), %s394_s11, 128, %s396_s21, %s360_s18   ;;  %v306_v62 = vadd.f32 %v585_v38, %v299_v61  ;;  %v338_v2 = vand.u32 2147483648, %v326_v59  ;;  %vm332_vm2 = vweird.f32 %v326_v59  ;;  %v336_v4 = vand.u32 2147483647, %v326_v59 }
  0x40   : > { %s376_s10 = scalar_lea.hbm %s1040_s1, %s934_s6  ;;  %s193_s11 = scalar_lea.vmem [#allocation2], %s930_s5 }
  0x41   : > { %v313_v1 = vadd.f32 %v587_v42, %v306_v62  ;;  %v339_v6 = vor.u32 1.1754944e-38, %v338_v2  ;;  %vm337_vm5 = vcmp.eq.f32.partialorder %v336_v4, 8.507059e+37  ;;  %s378_s21 = sshll.u32 %s193_s11, 4  ;;  %s380_s23 = sshll.u32 %s376_s10, 4  ;;  %s379_s21 = int_to_ptr.vmem [resolvable:$true] %s378_s21  ;;  %s381_s23 = int_to_ptr.hbm [resolvable:$true] %s380_s23 }
  0x42   : > { %s355_s26 = scalar_lea.sflag [#allocation3], %s191_s4  ;;  %s713_s27 = sshra.s32 %s381_s23, 4  ;;  %s714_s27 = int_to_ptr.hbm [resolvable:$true] %s713_s27 }
  0x43   : > { %v668_v63 = vpop.eup %667  ;;  %v320_v7 = vadd.f32 %v589_v46, %v313_v1  ;;  %s715_s28 = scalar_lea.hbm %s714_s27, 8  ;;  %s719_s7 = scalar_lea.hbm %s1040_s1, 16 }
  0x44   : > { %v328_v0 = vmul.f32 %v668_v63, %v326_v59  ;;  %vm333_vm3 = vweird.f32 %v668_v63  ;;  %p716_p6 = scmp.ne.s32.totalorder %s714_s27, %s715_s28  ;;  %p720_p10 = scmp.lt.s32.totalorder %s714_s27, %s1040_s1 }
  0x45   : > { %vm334_vm4 = vmor %vm332_vm2, %vm333_vm3  ;;  %v342_v10 = vmul.f32 0.0625, %v320_v7  ;;  %p721_p11 = scmp.lt.s32.totalorder %s719_s7, %s715_s28 }
  0x46   : > { %v329_v3 = vsub.f32 1.0, %v328_v0  ;;  %p717_p7 = pnand %p716_p6, %p874_p4 }
  0x47   : > { %p722_p12 = por %p721_p11, %p720_p10 }
  0x48   : > { %v330_v5 = vmul.f32 %v668_v63, %v329_v3  ;;  %p718_p9 = pneg %p717_p7 }
  0x4a   : > { %v331_v8 = vadd.f32 %v668_v63, %v330_v5  ;;  %p723_p13 = pnand %p722_p12, %p718_p9 }
  0x4c   : > { %v335_v9 = vsel %vm334_vm4, %v668_v63, %v331_v8 }
  0x4d   : > { %v340_v11 = vsel %vm337_vm5, %v339_v6, %v335_v9 }
  0x4e   : > { %v341_v12 = vmul.f32 %v340_v11, %v320_v7 }
  0x50   : > { %v343_v13 = vsel %vm325_vm1, %v341_v12, %v342_v10  ;;  %v346_v14 = vsel %vm325_vm1, %v341_v12, 1.0 }
  0x51   : > { %351 = vst.msk [vmem:[%s193_s11] sm:$0xff] %vm350_vm0, %v343_v13  ;;  %669 = vlog2.f32 %v346_v14 }
  0x52   : > { %726 = shalt.err (!%p723_p13)
}
  0x53   : > { %601 = dma.vmem_to_hbm [thread:$0]  (%p874_p4), %s379_s21, 128, %s381_s23, %s355_s26  }
  0x54   : > { %s406_s11 = scalar_lea.hbm %s1042_s3, %s934_s6  ;;  %s207_s29 = scalar_lea.vmem [#allocation6], %s930_s5 }
  0x55   : > { %s408_s30 = sshll.u32 %s207_s29, 4  ;;  %s410_s19 = sshll.u32 %s406_s11, 4  ;;  %s409_s30 = int_to_ptr.vmem [resolvable:$true] %s408_s30  ;;  %s411_s19 = int_to_ptr.hbm [resolvable:$true] %s410_s19 }
  0x56   : > { %s741_s27 = sshra.s32 %s411_s19, 4  ;;  %s747_s21 = scalar_lea.hbm %s1042_s3, 16  ;;  %s742_s27 = int_to_ptr.hbm [resolvable:$true] %s741_s27 }
  0x57   : > { %v670_v15 = vpop.eup %669  ;;  %s743_s28 = scalar_lea.hbm %s742_s27, 8  ;;  %p748_p3 = scmp.lt.s32.totalorder %s742_s27, %s1042_s3 }
  0x58   : > { %v348_v16 = vmul.f32 0.6931472, %v670_v15  ;;  %p744_p0 = scmp.ne.s32.totalorder %s742_s27, %s743_s28  ;;  %p749_p5 = scmp.lt.s32.totalorder %s747_s21, %s743_s28 }
  0x5a   : > { %v349_v17 = vsel %vm325_vm1, %v348_v16, 0.0  ;;  %p745_p1 = pnand %p744_p0, %p874_p4  ;;  %p750_p6 = por %p749_p5, %p748_p3 }
  0x5b   : > { %353 = vst.msk [vmem:[%s207_s29] sm:$0xff] %vm350_vm0, %v349_v17 }
  0x5c   : > { %p746_p2 = pneg %p745_p1 }
  0x5e   : > { %p751_p7 = pnand %p750_p6, %p746_p2 }
  0x60   : > { %754 = shalt.err (!%p751_p7)
}
  0x61   : > { %603 = dma.vmem_to_hbm [thread:$0]  (%p874_p4), %s409_s30, 128, %s411_s19, %s360_s18  }
  0x62 PF: > { %p617_p9 = scmp.ge.s32.totalorder %s809_s17, 2  ;;  %s422_s7 = sand.u32 1, %s789_s12  }
  0x63   : > { %s423_s8 = scalar_lea.sflag [#allocation3], %s422_s7 }
  0x64   : > { %p608_p10 = pnand %p617_p9, %p883_p8 }
  0x66   : > { %p609_p11 = pneg %p608_p10 }
  0x68   : > { %780 = dma.done.wait (%p609_p11), %s423_s8, 128  }
  0x69   : > { %782 = vsyncadd (%p609_p11), %s423_s8, 4294967168  ;;  %s1046_s9 = sadd.s32 4294967294, %s809_s17  }
  0x6a   : > { %s432_s4 = sand.u32 1, %s1046_s9  }
  0x6b   : > { %s433_s10 = scalar_lea.sflag [#allocation5], %s432_s4 }
  0x6c   : > { %784 = dma.done.wait (%p609_p11), %s433_s10, 256  }
  0x6d   : > { %786 = vsyncadd (%p609_p11), %s433_s10, 4294967040  ;;  %s20_s17 = sadd.s32 1, %s809_s17   ;;  %s1047_s12 = smov %s793_s13 }
  0x6e   : > { %p17_p4 = scmp.ge.s32.totalorder %s20_s17, 4   ;;  %s1048_s13 = smov %s797_s14 }
  0x6f   : > { %s1049_s14 = smov %s889_s25  ;;  %s1050_s15 = smov %s805_s16 }
  0x70   : > { %s1051_s16 = smov %s1053_s20  ;;  %19 = sbr.rel (!%p17_p4) target bundleno = 6 (0x6), region = 106 }
  0x75   :  { %449 = vsyncpa [#allocation3], 1 }
  0x76   :  { %451 = vsyncpa [#allocation3 + $0x1], 1 }
  0x77   :  { %452 = vsyncpa [#allocation5], 1 }
  0x78   :  { %454 = vsyncpa [#allocation5 + $0x1], 1 }

</bundles_post_ra>
